<compile_context>
chip_gen: v7x
topology: tpu7x:2x2x1
jax: 0.10.0
libtpu: 0.0.40
codegen_flags: <defaults>
</compile_context>

<pallas_src>
import functools

import jax
import jax.numpy as jnp
from jax.experimental import pallas as pl
from jax.experimental.pallas import tpu as pltpu


def _round_up(x, m):
    return (x + m - 1) // m * m


def _device_tile_targets():
    """Generation-tuned LM-head tile targets (tm, tn, tk) + VMEM cap in bytes."""
    try:
        kind = jax.devices()[0].device_kind.lower()
    except Exception:  # pragma: no cover - defensive
        kind = ""
    if "v6" in kind:   # v6e: ~918 TF/s vs ~1.4 TB/s -> needs ~650-700 flops/byte
        return 1024, 2048, 2048, 100 * 1024 * 1024
    if "v7" in kind:   # v7x: 64 MiB physical VMEM, ~311 flops/byte roofline
        return 512, 1024, 1024, 52 * 1024 * 1024
    if "v5" in kind:   # v5e: ~240 flops/byte roofline; bigger tiles gain nothing
        return 512, 1024, 1024, 100 * 1024 * 1024
    return 512, 1024, 1024, 48 * 1024 * 1024


def _lm_plan(H, V, M=None):
    """Static tiling plan for the LM head (shared by prepare_params / forward)."""
    tm_t, tn_t, tk_t, vmem_cap = _device_tile_targets()
    K128 = _round_up(H, 128)
    V128 = _round_up(V, 128)
    if K128 <= tk_t:
        tk, K_pad = K128, K128          # single K step: x tile resident across N sweep
    else:
        tk = tk_t
        K_pad = _round_up(K128, tk)
    tn = min(tn_t, V128)                # clamp to problem at small shapes
    N_pad = _round_up(V128, tn)
    plan = dict(tk=tk, K_pad=K_pad, tn=tn, N_pad=N_pad, vmem_cap=vmem_cap)
    if M is not None:
        tm = min(tm_t, _round_up(M, 8))
        plan["tm"] = tm
        plan["M_pad"] = _round_up(M, tm)
    return plan


# ---------------------------------------------------------------------------
# One-time parameter preparation (hoisted out of the per-call forward path).
# ---------------------------------------------------------------------------
def prepare_params(params, out_dtype=jnp.bfloat16):
    w_lm, b_lm = params["w_lm"], params["b_lm"]
    w_emb, b_emb = params["w_emb"], params["b_emb"]
    H, V = w_lm.shape
    E = w_emb.shape[1]

    plan = _lm_plan(H, V)
    K_pad, N_pad = plan["K_pad"], plan["N_pad"]
    if (H, V) == (K_pad, N_pad):        # skip zeros+set when already aligned
        w_lm_p = w_lm.astype(jnp.bfloat16)
        b_lm_p = b_lm.astype(jnp.float32).reshape(1, N_pad)
    else:
        w_lm_p = jnp.zeros((K_pad, N_pad), jnp.bfloat16).at[:H, :V].set(
            w_lm.astype(jnp.bfloat16))
        b_lm_p = jnp.zeros((1, N_pad), jnp.float32).at[0, :V].set(
            b_lm.astype(jnp.float32))

    E_pad = _round_up(E, 128)
    if E == E_pad:
        w_emb_p = w_emb.astype(jnp.bfloat16)
        b_emb_p = b_emb.astype(jnp.float32).reshape(1, E_pad)
    else:
        w_emb_p = jnp.zeros((H, E_pad), jnp.bfloat16).at[:, :E].set(
            w_emb.astype(jnp.bfloat16))
        b_emb_p = jnp.zeros((1, E_pad), jnp.float32).at[0, :E].set(
            b_emb.astype(jnp.float32))

    return dict(w_lm=w_lm_p, b_lm=b_lm_p, w_emb=w_emb_p, b_emb=b_emb_p,
                V=V, E=E, out_dtype=out_dtype)


# ---------------------------------------------------------------------------
# Kernel 1: LM head (tiled MXU matmul + bias).
# ---------------------------------------------------------------------------
def _lm_head_kernel_1k(x_ref, w_ref, b_ref, o_ref):
    # Whole H in one K tile: no accumulator / K loop needed, x stays resident
    # across the N sweep (its block index ignores j).
    o_ref[...] = (
        jnp.dot(x_ref[...], w_ref[...], preferred_element_type=jnp.float32)
        + b_ref[...]
    ).astype(o_ref.dtype)


def _lm_head_kernel_multik(x_ref, w_ref, b_ref, o_ref, acc_ref):
    # General K-tiled path; f32 scratch accumulator is required because the
    # output may be bf16.  (If logits stayed f32 one could accumulate into
    # o_ref directly and drop the scratch.)
    k = pl.program_id(2)

    @pl.when(k == 0)
    def _init():
        acc_ref[...] = jnp.zeros_like(acc_ref)

    acc_ref[...] += jnp.dot(x_ref[...], w_ref[...],
                            preferred_element_type=jnp.float32)

    @pl.when(k == pl.num_programs(2) - 1)
    def _finalize():
        o_ref[...] = (acc_ref[...] + b_ref[...]).astype(o_ref.dtype)


def lm_head_forward(x_bsh, w_lm_p, b_lm_p, V, out_dtype=jnp.bfloat16):
    B, S, H = x_bsh.shape
    M = B * S
    K_pad, N_pad = w_lm_p.shape

    plan = _lm_plan(H, V, M=M)
    assert plan["K_pad"] == K_pad and plan["N_pad"] == N_pad, "params not prepared with same plan"
    tm, tn, tk = plan["tm"], plan["tn"], plan["tk"]
    M_pad = plan["M_pad"]
    nk = K_pad // tk
    out_bytes = jnp.dtype(out_dtype).itemsize

    # Activation pad/cast (per-call; skipped when already aligned).
    x2d = x_bsh.reshape(M, H).astype(jnp.bfloat16)
    if (M, H) != (M_pad, K_pad):
        x_p = jnp.zeros((M_pad, K_pad), jnp.bfloat16).at[:M, :H].set(x2d)
    else:
        x_p = x2d

    # vmem limit from the actual double-buffered footprint, capped per device.
    vmem_bytes = 2 * (tm * tk * 2 + tk * tn * 2 + tn * 4 + tm * tn * out_bytes)
    if nk > 1:
        vmem_bytes += tm * tn * 4
    vmem_limit = min(plan["vmem_cap"], max(32 * 1024 * 1024, int(vmem_bytes * 1.5)))

    cost = pl.CostEstimate(
        flops=2 * M_pad * N_pad * K_pad,
        transcendentals=0,
        bytes_accessed=(M_pad * K_pad * 2 + K_pad * N_pad * 2 + N_pad * 4
                        + M_pad * N_pad * out_bytes),
    )

    if nk == 1:
        # NOTE: if the W_lm DMA ever shows up exposed in a profile, it is the
        # only block whose index changes every grid step; bump it alone with
        # pipeline_mode=pl.Buffered(3).
        logits_p = pl.pallas_call(
            _lm_head_kernel_1k,
            out_shape=jax.ShapeDtypeStruct((M_pad, N_pad), out_dtype),
            grid_spec=pltpu.PrefetchScalarGridSpec(
                num_scalar_prefetch=0,
                grid=(M_pad // tm, N_pad // tn),
                in_specs=[
                    pl.BlockSpec((tm, tk), lambda i, j: (i, 0)),   # x (resident over j)
                    pl.BlockSpec((tk, tn), lambda i, j: (0, j)),   # W_lm
                    pl.BlockSpec((1, tn), lambda i, j: (0, j)),    # bias
                ],
                out_specs=pl.BlockSpec((tm, tn), lambda i, j: (i, j)),
            ),
            compiler_params=pltpu.CompilerParams(
                dimension_semantics=("parallel", "parallel"),
                vmem_limit_bytes=vmem_limit),
            cost_estimate=cost,
        )(x_p, w_lm_p, b_lm_p)
    else:
        logits_p = pl.pallas_call(
            _lm_head_kernel_multik,
            out_shape=jax.ShapeDtypeStruct((M_pad, N_pad), out_dtype),
            grid_spec=pltpu.PrefetchScalarGridSpec(
                num_scalar_prefetch=0,
                grid=(M_pad // tm, N_pad // tn, nk),
                in_specs=[
                    pl.BlockSpec((tm, tk), lambda i, j, k: (i, k)),
                    pl.BlockSpec((tk, tn), lambda i, j, k: (k, j)),
                    pl.BlockSpec((1, tn), lambda i, j, k: (0, j)),
                ],
                out_specs=pl.BlockSpec((tm, tn), lambda i, j, k: (i, j)),
                scratch_shapes=[pltpu.VMEM((tm, tn), jnp.float32)],
            ),
            compiler_params=pltpu.CompilerParams(
                dimension_semantics=("parallel", "parallel", "arbitrary"),
                vmem_limit_bytes=vmem_limit),
            cost_estimate=cost,
        )(x_p, w_lm_p, b_lm_p)

    return logits_p[:M, :V].reshape(B, S, V)


# ---------------------------------------------------------------------------
# Kernel 2: embedder (mean-pool over S as a reduction grid axis, then
# bf16 MXU matmul + bias + l2-norm on the final step).
# ---------------------------------------------------------------------------
def _pool_emb_kernel(x_ref, w_ref, b_ref, o_ref, acc_ref, *, inv_s):
    s = pl.program_id(0)

    @pl.when(s == 0)
    def _init():
        acc_ref[...] = jnp.zeros_like(acc_ref)

    acc_ref[...] += jnp.sum(x_ref[...].astype(jnp.float32), axis=1)

    @pl.when(s == pl.num_programs(0) - 1)
    def _finalize():
        pooled = (acc_ref[...] * inv_s).astype(jnp.bfloat16)
        y = jnp.dot(pooled, w_ref[...], preferred_element_type=jnp.float32) + b_ref[...]
        sq = jnp.sum(y * y, axis=-1, keepdims=True)
        o_ref[...] = y * jax.lax.rsqrt(sq + 1e-12)


def _choose_s_tile(S, H):
    # Only tile the sequence axis when the (8,128) block constraint allows it.
    if H % 128 != 0 or S % 8 != 0:
        return S
    ts = min(S, 512)
    while S % ts != 0:
        ts -= 8
    return max(ts, 8)


def emb_forward(x_bsh, w_emb_p, b_emb_p, E):
    B, S, H = x_bsh.shape
    E_pad = w_emb_p.shape[1]
    ts = _choose_s_tile(S, H)
    ns = S // ts

    out = pl.pallas_call(
        functools.partial(_pool_emb_kernel, inv_s=1.0 / S),
        out_shape=jax.ShapeDtypeStruct((B, E_pad), jnp.float32),
        grid_spec=pltpu.PrefetchScalarGridSpec(
            num_scalar_prefetch=0,
            grid=(ns,),
            in_specs=[
                pl.BlockSpec((B, ts, H), lambda s: (0, s, 0)),   # hidden states
                pl.BlockSpec((H, E_pad), lambda s: (0, 0)),      # W_e (bf16)
                pl.BlockSpec((1, E_pad), lambda s: (0, 0)),      # b_e
            ],
            out_specs=pl.BlockSpec((B, E_pad), lambda s: (0, 0)),
            scratch_shapes=[pltpu.VMEM((B, H), jnp.float32)],
        ),
        compiler_params=pltpu.CompilerParams(
            dimension_semantics=("arbitrary",)),
        cost_estimate=pl.CostEstimate(
            flops=B * S * H + 2 * B * H * E_pad + 3 * B * E_pad,
            transcendentals=B,
            bytes_accessed=(x_bsh.dtype.itemsize * B * S * H
                            + 2 * H * E_pad + 4 * E_pad + 4 * B * E_pad),
        ),
    )(x_bsh, w_emb_p, b_emb_p)
    return out[:, :E]


# ---------------------------------------------------------------------------
# ModelWrapper.forward equivalent: both sub-models on the same inputs, tuple out.
# ---------------------------------------------------------------------------
@functools.partial(jax.jit, static_argnames=("V", "E", "out_dtype"))
def _wrapper_fwd(x, w_lm, b_lm, w_emb, b_emb, *, V, E, out_dtype):
    lm_out = lm_head_forward(x, w_lm, b_lm, V, out_dtype)
    emb_out = emb_forward(x, w_emb, b_emb, E)
    return (lm_out, emb_out)


def model_wrapper_forward(prepared, *, inputs_embeds):
    return _wrapper_fwd(inputs_embeds, prepared["w_lm"], prepared["b_lm"],
                        prepared["w_emb"], prepared["b_emb"],
                        V=prepared["V"], E=prepared["E"],
                        out_dtype=prepared["out_dtype"])


if __name__ == "__main__":
    # Small shapes consistent with an LM/embedder pair.
    B, S, H, V, E = 2, 8, 32, 64, 32

    key = jax.random.PRNGKey(0)
    k_x, k_wlm, k_blm, k_we, k_be = jax.random.split(key, 5)

    x = jax.random.normal(k_x, (B, S, H), dtype=jnp.float32)
    params = {
        "w_lm": jax.random.normal(k_wlm, (H, V), dtype=jnp.float32) * 0.02,
        "b_lm": jax.random.normal(k_blm, (V,), dtype=jnp.float32) * 0.01,
        "w_emb": jax.random.normal(k_we, (H, E), dtype=jnp.float32) * 0.02,
        "b_emb": jax.random.normal(k_be, (E,), dtype=jnp.float32) * 0.01,
    }

    prepared = prepare_params(params)   # one-time weight pad/cast, hoisted out of fwd
    lm_out, emb_out = model_wrapper_forward(prepared, inputs_embeds=x)
    jax.block_until_ready((lm_out, emb_out))

    # Reference in plain JAX, mirroring the bf16 MXU input path
    # (accumulation stays f32 in both).
    xb = x.astype(jnp.bfloat16).astype(jnp.float32)
    wb = params["w_lm"].astype(jnp.bfloat16).astype(jnp.float32)
    lm_ref = (xb.reshape(B * S, H) @ wb + params["b_lm"]).reshape(B, S, V)

    pooled = x.mean(axis=1)
    pb = pooled.astype(jnp.bfloat16).astype(jnp.float32)
    web = params["w_emb"].astype(jnp.bfloat16).astype(jnp.float32)
    e_ref = pb @ web + params["b_emb"]
    e_ref = e_ref / jnp.sqrt(jnp.sum(e_ref * e_ref, axis=-1, keepdims=True) + 1e-12)

    assert lm_out.shape == (B, S, V) and emb_out.shape == (B, E)
    assert lm_out.dtype == jnp.bfloat16      # bf16 logits writeback (half HBM traffic)
    assert jnp.allclose(lm_out.astype(jnp.float32), lm_ref, atol=2e-2, rtol=2e-2)
    assert jnp.allclose(emb_out, e_ref, atol=1e-2, rtol=1e-2)

    print("KERNEL_OK")
</pallas_src>

<mosaic_0001>
module attributes {stable_mosaic.version = 11 : i64} {
  func.func @_lm_head_kernel_1k(%arg0: i32, %arg1: i32, %arg2: memref<16x128xbf16, #tpu.memory_space<vmem>>, %arg3: memref<128x128xbf16, #tpu.memory_space<vmem>>, %arg4: memref<1x128xf32, #tpu.memory_space<vmem>>, %arg5: memref<16x128xbf16, #tpu.memory_space<vmem>>) attributes {dimension_semantics = [#tpu.dimension_semantics<parallel>, #tpu.dimension_semantics<parallel>], iteration_bounds = array<i64: 1, 1>, scalar_prefetch = 0 : i64, scratch_operands = 0 : i64, tpu.core_type = #tpu.core_type<tc>, window_params = [{transform_indices = @transform_0, window_bounds = array<i64: 16, 128>}, {transform_indices = @transform_1, window_bounds = array<i64: 128, 128>}, {transform_indices = @transform_2, window_bounds = array<i64: 1, 128>}, {transform_indices = @transform_3, window_bounds = array<i64: 16, 128>}]} {
    %c0 = arith.constant 0 : index
    %c0_0 = arith.constant 0 : index
    %0 = vector.load %arg2[%c0, %c0_0] : memref<16x128xbf16, #tpu.memory_space<vmem>>, vector<16x128xbf16>
    %c0_1 = arith.constant 0 : index
    %c0_2 = arith.constant 0 : index
    %1 = vector.load %arg3[%c0_1, %c0_2] : memref<128x128xbf16, #tpu.memory_space<vmem>>, vector<128x128xbf16>
    %cst = arith.constant dense<0.000000e+00> : vector<16x128xf32>
    %2 = tpu.matmul %0, %1, %cst {dimension_numbers = #tpu.dot_dimension_numbers<[1], [0], [0], [1], [0, 0, 1, 1], [], []>} : vector<16x128xbf16>, vector<128x128xbf16>, vector<16x128xf32> -> vector<16x128xf32>
    %c0_3 = arith.constant 0 : index
    %c0_4 = arith.constant 0 : index
    %3 = vector.load %arg4[%c0_3, %c0_4] : memref<1x128xf32, #tpu.memory_space<vmem>>, vector<1x128xf32>
    %4 = vector.broadcast %3 : vector<1x128xf32> to vector<16x128xf32>
    %5 = arith.addf %2, %4 : vector<16x128xf32>
    %6 = arith.truncf %5 : vector<16x128xf32> to vector<16x128xbf16>
    %c0_5 = arith.constant 0 : index
    %c0_6 = arith.constant 0 : index
    %7 = vector.load %arg5[%c0_5, %c0_6] : memref<16x128xbf16, #tpu.memory_space<vmem>>, vector<16x128xbf16>
    tpu.vector_store %arg5[%c0_5, %c0_6], %6 {strides = array<i32>} : memref<16x128xbf16, #tpu.memory_space<vmem>>, vector<16x128xbf16>,
    return
  }
  func.func @transform_0(%arg0: i32, %arg1: i32) -> (i32, i32) {
    %c0_i32 = arith.constant 0 : i32
    %c0_i32_0 = arith.constant 0 : i32
    return %arg0, %c0_i32 : i32, i32
  }
  func.func @transform_1(%arg0: i32, %arg1: i32) -> (i32, i32) {
    %c0_i32 = arith.constant 0 : i32
    %c0_i32_0 = arith.constant 0 : i32
    return %c0_i32, %arg1 : i32, i32
  }
  func.func @transform_2(%arg0: i32, %arg1: i32) -> (i32, i32) {
    %c0_i32 = arith.constant 0 : i32
    %c0_i32_0 = arith.constant 0 : i32
    return %c0_i32, %arg1 : i32, i32
  }
  func.func @transform_3(%arg0: i32, %arg1: i32) -> (i32, i32) {
    %c0_i32 = arith.constant 0 : i32
    return %arg0, %arg1 : i32, i32
  }
}

module attributes {stable_mosaic.version = 11 : i64} {
  func.func @_pool_emb_kernel(%arg0: i32, %arg1: memref<2x8x32xf32, #tpu.memory_space<vmem>>, %arg2: memref<32x128xbf16, #tpu.memory_space<vmem>>, %arg3: memref<1x128xf32, #tpu.memory_space<vmem>>, %arg4: memref<2x128xf32, #tpu.memory_space<vmem>>, %arg5: memref<2x32xf32, #tpu.memory_space<vmem>>) attributes {dimension_semantics = [#tpu.dimension_semantics<arbitrary>], iteration_bounds = array<i64: 1>, scalar_prefetch = 0 : i64, scratch_operands = 1 : i64, tpu.core_type = #tpu.core_type<tc>, window_params = [{transform_indices = @transform_0, window_bounds = array<i64: 2, 8, 32>}, {pipeline_mode = #tpu.pipeline_mode<synchronous>, transform_indices = @transform_1, window_bounds = array<i64: 32, 128>}, {pipeline_mode = #tpu.pipeline_mode<synchronous>, transform_indices = @transform_2, window_bounds = array<i64: 1, 128>}, {pipeline_mode = #tpu.pipeline_mode<synchronous>, transform_indices = @transform_3, window_bounds = array<i64: 2, 128>}]} {
    %c0_i32 = arith.constant 0 : i32
    %0 = arith.cmpi eq, %arg0, %c0_i32 : i32
    %1 = arith.extui %0 : i1 to i32
    %c0_i32_0 = arith.constant 0 : i32
    %2 = arith.cmpi ne, %1, %c0_i32_0 : i32
    scf.if %2 {
      %cst_9 = arith.constant 0.000000e+00 : f32
      %11 = vector.broadcast %cst_9 : f32 to vector<2x32xf32>
      %c0_10 = arith.constant 0 : index
      %c0_11 = arith.constant 0 : index
      %12 = vector.load %arg5[%c0_10, %c0_11] : memref<2x32xf32, #tpu.memory_space<vmem>>, vector<2x32xf32>
      tpu.vector_store %arg5[%c0_10, %c0_11], %11 {strides = array<i32>} : memref<2x32xf32, #tpu.memory_space<vmem>>, vector<2x32xf32>,
    } else {
    }
    %c0 = arith.constant 0 : index
    %c0_1 = arith.constant 0 : index
    %3 = vector.load %arg5[%c0, %c0_1] : memref<2x32xf32, #tpu.memory_space<vmem>>, vector<2x32xf32>
    %c0_2 = arith.constant 0 : index
    %c0_3 = arith.constant 0 : index
    %c0_4 = arith.constant 0 : index
    %4 = vector.load %arg1[%c0_2, %c0_3, %c0_4] : memref<2x8x32xf32, #tpu.memory_space<vmem>>, vector<2x8x32xf32>
    %cst = arith.constant dense<0.000000e+00> : vector<2x32xf32>
    %5 = vector.multi_reduction <add>, %4, %cst [1] : vector<2x8x32xf32> to vector<2x32xf32>
    %6 = arith.addf %3, %5 : vector<2x32xf32>
    %c0_5 = arith.constant 0 : index
    %c0_6 = arith.constant 0 : index
    %7 = vector.load %arg5[%c0_5, %c0_6] : memref<2x32xf32, #tpu.memory_space<vmem>>, vector<2x32xf32>
    tpu.vector_store %arg5[%c0_5, %c0_6], %6 {strides = array<i32>} : memref<2x32xf32, #tpu.memory_space<vmem>>, vector<2x32xf32>,
    %c0_i32_7 = arith.constant 0 : i32
    %8 = arith.cmpi eq, %arg0, %c0_i32_7 : i32
    %9 = arith.extui %8 : i1 to i32
    %c0_i32_8 = arith.constant 0 : i32
    %10 = arith.cmpi ne, %9, %c0_i32_8 : i32
    scf.if %10 {
      %c0_9 = arith.constant 0 : index
      %c0_10 = arith.constant 0 : index
      %11 = vector.load %arg5[%c0_9, %c0_10] : memref<2x32xf32, #tpu.memory_space<vmem>>, vector<2x32xf32>
      %cst_11 = arith.constant 1.250000e-01 : f32
      %12 = vector.broadcast %cst_11 : f32 to vector<2x32xf32>
      %13 = arith.mulf %11, %12 : vector<2x32xf32>
      %14 = arith.truncf %13 : vector<2x32xf32> to vector<2x32xbf16>
      %c0_12 = arith.constant 0 : index
      %c0_13 = arith.constant 0 : index
      %15 = vector.load %arg2[%c0_12, %c0_13] : memref<32x128xbf16, #tpu.memory_space<vmem>>, vector<32x128xbf16>
      %cst_14 = arith.constant dense<0.000000e+00> : vector<2x128xf32>
      %16 = tpu.matmul %14, %15, %cst_14 {dimension_numbers = #tpu.dot_dimension_numbers<[1], [0], [0], [1], [0, 0, 1, 1], [], []>} : vector<2x32xbf16>, vector<32x128xbf16>, vector<2x128xf32> -> vector<2x128xf32>
      %c0_15 = arith.constant 0 : index
      %c0_16 = arith.constant 0 : index
      %17 = vector.load %arg3[%c0_15, %c0_16] : memref<1x128xf32, #tpu.memory_space<vmem>>, vector<1x128xf32>
      %18 = vector.broadcast %17 : vector<1x128xf32> to vector<2x128xf32>
      %19 = arith.addf %16, %18 : vector<2x128xf32>
      %20 = arith.mulf %19, %19 : vector<2x128xf32>
      %cst_17 = arith.constant dense<0.000000e+00> : vector<2xf32>
      %21 = vector.multi_reduction <add>, %20, %cst_17 [1] : vector<2x128xf32> to vector<2xf32>
      %22 = vector.shape_cast %21 : vector<2xf32> to vector<2x1xf32>
      %cst_18 = arith.constant 9.99999996E-13 : f32
      %23 = vector.broadcast %cst_18 : f32 to vector<2x1xf32>
      %24 = arith.addf %22, %23 : vector<2x1xf32>
      %25 = math.rsqrt %24 : vector<2x1xf32>
      %26 = vector.broadcast %25 : vector<2x1xf32> to vector<2x128xf32>
      %27 = arith.mulf %19, %26 : vector<2x128xf32>
      %c0_19 = arith.constant 0 : index
      %c0_20 = arith.constant 0 : index
      %28 = vector.load %arg4[%c0_19, %c0_20] : memref<2x128xf32, #tpu.memory_space<vmem>>, vector<2x128xf32>
      tpu.vector_store %arg4[%c0_19, %c0_20], %27 {strides = array<i32>} : memref<2x128xf32, #tpu.memory_space<vmem>>, vector<2x128xf32>,
    } else {
    }
    return
  }
  func.func @transform_0(%arg0: i32) -> (i32, i32, i32) {
    %c0_i32 = arith.constant 0 : i32
    %c0_i32_0 = arith.constant 0 : i32
    %c0_i32_1 = arith.constant 0 : i32
    return %c0_i32, %arg0, %c0_i32_0 : i32, i32, i32
  }
  func.func @transform_1(%arg0: i32) -> (i32, i32) {
    %c0_i32 = arith.constant 0 : i32
    %c0_i32_0 = arith.constant 0 : i32
    %c0_i32_1 = arith.constant 0 : i32
    return %c0_i32, %c0_i32_0 : i32, i32
  }
  func.func @transform_2(%arg0: i32) -> (i32, i32) {
    %c0_i32 = arith.constant 0 : i32
    %c0_i32_0 = arith.constant 0 : i32
    %c0_i32_1 = arith.constant 0 : i32
    return %c0_i32, %c0_i32_0 : i32, i32
  }
  func.func @transform_3(%arg0: i32) -> (i32, i32) {
    %c0_i32 = arith.constant 0 : i32
    %c0_i32_0 = arith.constant 0 : i32
    %c0_i32_1 = arith.constant 0 : i32
    return %c0_i32, %c0_i32_0 : i32, i32
  }
}

</mosaic_0001>

<bundles_post_ra>
// kernel: _wrapper_fwd.2
= control target key start
LH: loop header
LB: loop body
LE: loop exit
PB: predicated region body
PF: predicated region fallthrough
CT: control target
= control target key end

     0   :  { %8 = vsyncpa [#allocation3], 0  ;;  %s250_s12 = smov [#allocation2]   ;;  %s296_s0 = inlined_call_operand.vmem [shape: bf16[16,128], index: 0, kind: input, shape index: {}]   ;;  %s297_s1 = inlined_call_operand.hbm [shape: bf16[128,128], index: 1, kind: input, shape index: {}]   ;;  %s298_s2 = inlined_call_operand.vmem [shape: f32[1,128], index: 2, kind: input, shape index: {}]   ;;  %s299_s3 = inlined_call_operand.vmem [shape: bf16[16,128], index: 3, kind: output, shape index: {}]  }
   0x1   :  { %s16_s13 = sshll.u32 %s250_s12, 4  ;;  %s226_s16 = scalar_lea.hbm %s297_s1, 1024  ;;  %s17_s13 = int_to_ptr.vmem [resolvable:$true] %s16_s13 }
   0x2   :  { %p227_p0 = scmp.ne.s32.totalorder %s297_s1, %s226_s16  ;;  %p230_p1 = scmp.lt.u32.totalorder %s226_s16, %s297_s1 }
   0x4   :  { %p232_p2 = pnand %p230_p1, %p227_p0 }
   0x6   :  { %235 = shalt.err (!%p232_p2)
}
   0x7   :  { %s236_s21 = scalar_lea.vmem %s17_s13, 1024  ;;  %p241_p4 = scmp.lt.s32.totalorder %s17_s13, %s17_s13 }
   0x8   :  { %p237_p3 = scmp.ne.s32.totalorder %s17_s13, %s236_s21  ;;  %p242_p5 = scmp.lt.s32.totalorder %s236_s21, %s236_s21 }
   0xa   :  { %p243_p6 = por %p242_p5, %p241_p4 }
   0xc   :  { %p244_p7 = pnand %p243_p6, %p237_p3 }
   0xe   :  { %247 = shalt.err (!%p244_p7)
}
   0xf   :  { %s251_s22 = smov 64   ;;  %s252_s23 = smov 4  }
  0x10   :  { %22 = dma.hbm_to_vmem [thread:$0]  %s297_s1, 1024, %s17_s13, [#allocation3], %s251_s22, %s251_s22, %s252_s23  }
  0x11   :  { %248 = dma.done.wait [#allocation3], 1024  }
  0x12   :  { %249 = vsyncadd [#allocation3], 4294966272  ;;  %v253_v0 = vmov 0.0   ;;  %vm254_vm0 = vmmov 0   ;;  %v217_v1 = vld [vmem:[#allocation2] sm:$0xff]   ;;  %v218_v2 = vld [vmem:[#allocation2 + $0x8] sm:$0xff]  }
  0x13   :  { %192 = vmatprep.subr.bf16.mxu0 %v253_v0  ;;  %208 = vmatprep.mubr.msk.bf16.mxu0 %vm254_vm0, %v253_v0  ;;  %v219_v3 = vld [vmem:[#allocation2 + $0x10] sm:$0xff]   ;;  %v220_v4 = vld [vmem:[#allocation2 + $0x18] sm:$0xff]   ;;  %v221_v5 = vld [vmem:[#allocation2 + $0x20] sm:$0xff]  }
  0x14   :  { %193 = vmatpush3.bf16.msra.mxu0 %v217_v1  ;;  %v222_v6 = vld [vmem:[#allocation2 + $0x28] sm:$0xff]   ;;  %v223_v7 = vld [vmem:[#allocation2 + $0x30] sm:$0xff]   ;;  %v224_v8 = vld [vmem:[#allocation2 + $0x38] sm:$0xff]  }
  0x15   :  { %194 = vmatprep.subr.bf16.mxu0 %v253_v0  ;;  %v225_v9 = vld [vmem:[%s296_s0] sm:$0xff]  }
  0x16   :  { %v164_v10 = vld [vmem:[%s298_s2] ss:$0 sm:$0xff] }
  0x18   :  { %195 = vmatpush3.bf16.msra.mxu0 %v218_v2 }
  0x19   :  { %196 = vmatprep.subr.bf16.mxu0 %v253_v0 }
  0x1c   :  { %197 = vmatpush3.bf16.msra.mxu0 %v219_v3 }
  0x1d   :  { %198 = vmatprep.subr.bf16.mxu0 %v253_v0 }
  0x20   :  { %199 = vmatpush3.bf16.msra.mxu0 %v220_v4 }
  0x21   :  { %200 = vmatprep.subr.bf16.mxu0 %v253_v0 }
  0x24   :  { %201 = vmatpush3.bf16.msra.mxu0 %v221_v5 }
  0x25   :  { %202 = vmatprep.subr.bf16.mxu0 %v253_v0 }
  0x28   :  { %203 = vmatpush3.bf16.msra.mxu0 %v222_v6 }
  0x29   :  { %204 = vmatprep.subr.bf16.mxu0 %v253_v0 }
  0x2c   :  { %205 = vmatpush3.bf16.msra.mxu0 %v223_v7 }
  0x2d   :  { %206 = vmatprep.subr.bf16.mxu0 %v253_v0 }
  0x30   :  { %207 = vmatpush3.bf16.msra.mxu0 %v224_v8 }
  0x33   :  { %209 = vmatmul.mubr.bf16.vlgmr.msra.gmra.mrb[0].mxu0 %v225_v9 }
 0x106   :  { %v142_v11 = vpop.f32.mrb[0].mxu0 }
 0x107   :  { %v210_v12 = vpop.f32.mrb[1].mxu0  ;;  %v143_v14 = vadd.f32 %v164_v10, %v142_v11 }
 0x108   :  { %v145_v13 = vpop.f32.mrb[2].mxu0 }
 0x109   :  { %v146_v15 = vadd.f32 %v164_v10, %v145_v13  ;;  %v211_v16 = vpop.f32.mrb[3].mxu0 }
 0x10b   :  { %v181_v17 = vpack.c.bf16 %v146_v15, %v143_v14 }
 0x10d   :  { %182 = vst [vmem:[%s299_s3] sm:$0xff] %v181_v17  }
 0x10e   :  { %163 = vsyncpa [#allocation3], 1 }

// kernel: _wrapper_fwd.3
= control target key start
LH: loop header
LB: loop body
LE: loop exit
PB: predicated region body
PF: predicated region fallthrough
CT: control target
= control target key end

     0   :  { %vm20_vm0 = vcmask 254976   ;;  %v189_v0 = vmov 0.0   ;;  %vm190_vm1 = vmmov 0   ;;  %vm25_vm2 = vcmask 261120   ;;  %s244_s0 = inlined_call_operand.vmem [shape: f32[2,8,32], index: 0, kind: input, shape index: {}]   ;;  %s245_s1 = inlined_call_operand.vmem [shape: bf16[32,128], index: 1, kind: input, shape index: {}]   ;;  %s246_s2 = inlined_call_operand.vmem [shape: f32[1,128], index: 2, kind: input, shape index: {}]   ;;  %s247_s3 = inlined_call_operand.hbm [shape: f32[2,128], index: 3, kind: output, shape index: {}]  }
   0x1   :  { %21 = vst.msk [vmem:[#allocation2] sm:$0x3] %vm20_vm0, %v189_v0  ;;  %150 = vmatprep.subr.bf16.mxu0 %v189_v0  ;;  %v161_v1 = vld [vmem:[%s245_s1] sm:$0xff]   ;;  %154 = vmatprep.mubr.msk.bf16.mxu0 %vm190_vm1, %v189_v0  ;;  %v24_v3 = vld [vmem:[%s244_s0 + $0x8] sm:$0xff] }
   0x2   :  { %v23_v2 = vld [vmem:[%s244_s0] sm:$0xff]  ;;  %151 = vmatpush3.bf16.msra.mxu0 %v161_v1  ;;  %v162_v4 = vld [vmem:[%s245_s1 + $0x8] sm:$0xff]   ;;  %v33_v6 = vsel %vm25_vm2, %v24_v3, 0.0 }
   0x3   :  { %v26_v5 = vsel %vm25_vm2, %v23_v2, 0.0 }
   0x4   :  { %8 = vsyncpa [#allocation4], 0  ;;  %152 = vmatprep.subr.bf16.mxu0 %v189_v0  ;;  %v27_v7 = vrot.slane %v26_v5, 4  ;;  %v34_v8 = vrot.slane %v33_v6, 4  ;;  %vm42_vm3 = vcmask 1041409   ;;  %vm121_vm4 = vcmask 1041408  }
   0x5   :  { %v143_v25 = vld [vmem:[%s246_s2] ss:$0 sm:$0xff]  ;;  %s191_s20 = smov [#allocation3]  }
   0x6   :  { %v28_v9 = vadd.f32 %v27_v7, %v26_v5  ;;  %v35_v10 = vadd.f32 %v34_v8, %v33_v6  ;;  %153 = vmatpush3.bf16.msra.mxu0 %v162_v4  ;;  %s135_s21 = sshll.u32 %s191_s20, 4  ;;  %s136_s21 = int_to_ptr.vmem [resolvable:$true] %s135_s21 }
   0x7   :  { %s165_s22 = scalar_lea.vmem %s136_s21, 32  ;;  %p170_p1 = scmp.lt.s32.totalorder %s136_s21, %s136_s21 }
   0x8   :  { %v29_v11 = vrot.slane %v28_v9, 2  ;;  %v36_v12 = vrot.slane %v35_v10, 2  ;;  %v22_v17 = vld [vmem:[#allocation2] sm:$0x3]  ;;  %p166_p0 = scmp.ne.s32.totalorder %s136_s21, %s165_s22  ;;  %p171_p2 = scmp.lt.s32.totalorder %s165_s22, %s165_s22 }
   0xa   :  { %v30_v13 = vadd.f32 %v29_v11, %v28_v9  ;;  %v37_v14 = vadd.f32 %v36_v12, %v35_v10  ;;  %p172_p3 = por %p171_p2, %p170_p1 }
   0xc   :  { %v31_v15 = vrot.slane %v30_v13, 1  ;;  %v38_v16 = vrot.slane %v37_v14, 1  ;;  %p173_p4 = pnand %p172_p3, %p166_p0 }
   0xe   :  { %v32_v18 = vadd.f32 %v31_v15, %v30_v13  ;;  %v39_v19 = vadd.f32 %v38_v16, %v37_v14 }
  0x10   :  { %v43_v20 = vsel %vm42_vm3, %v39_v19, %v32_v18 }
  0x11   :  { %v45_v21 = vadd.f32 %v43_v20, %v22_v17 }
  0x13   :  { %47 = vst.msk [vmem:[#allocation2] sm:$0x3] %vm20_vm0, %v45_v21 }
  0x1a   :  { %v51_v22 = vld [vmem:[#allocation2] sm:$0x3] }
  0x1b   :  { %v52_v23 = vmul.f32 0.125, %v51_v22 }
  0x1d   :  { %v53_v24 = vpack.c.bf16 %v52_v23, %v52_v23 }
  0x1f   :  { %155 = vmatmul.mubr.msk.bf16.vlgmr.msra.gmra.mrb[0].mxu0 %vm25_vm2, %v53_v24 }
  0xf2   :  { %v114_v26 = vpop.f32.mrb[0].mxu0 }
  0xf3   :  { %v115_v27 = vadd.f32 %v143_v25, %v114_v26  ;;  %v156_v28 = vpop.f32.mrb[1].mxu0 }
  0xf4   :  { %v117_v29 = vpop.f32.mrb[2].mxu0 }
  0xf5   :  { %v157_v30 = vpop.f32.mrb[3].mxu0  ;;  %v120_v31 = vmul.f32 %v115_v27, %v115_v27 }
  0xf7   :  { %v122_v32 = vsel %vm121_vm4, %v120_v31, 0.0 }
  0xf8   :  { %123 = vadd.xlane.f32.xlu0 %v122_v32 }
 0x185   :  { %v124_v33 = vpop.xlane.xlu0 %123 }
 0x186   :  { %v125_v34 = vadd.f32 1e-12, %v124_v33 }
 0x188   :  { %163 = vrsqrt.f32 %v125_v34 }
 0x192   :  { %v164_v35 = vpop.eup %163 }
 0x193   :  { %v127_v36 = vmul.f32 %v164_v35, %v115_v27 }
 0x195   :  { %128 = vst [vmem:[#allocation3] sm:$0x3] %v127_v36 }
 0x196   :  { %176 = shalt.err (!%p173_p4)
}
 0x197   :  { %s177_s24 = scalar_lea.hbm %s247_s3, 32 }
 0x198   :  { %p178_p5 = scmp.ne.s32.totalorder %s247_s3, %s177_s24  ;;  %p181_p6 = scmp.lt.u32.totalorder %s177_s24, %s247_s3 }
 0x19a   :  { %p183_p7 = pnand %p181_p6, %p178_p5 }
 0x19c   :  { %186 = shalt.err (!%p183_p7)
}
 0x19d   :  { %138 = dma.vmem_to_hbm [thread:$0]  %s136_s21, 32, %s247_s3, [#allocation4]  }
 0x19e   :  { %187 = dma.done.wait [#allocation4], 32  }
 0x19f   :  { %188 = vsyncadd [#allocation4], 4294967264 }
 0x1a0   :  { %142 = vsyncpa [#allocation4], 1 }

</bundles_post_ra>
